<compile_context>
chip_gen: v6e
topology: v6e:2x2x1
jax: 0.10.0
libtpu: 0.0.40
codegen_flags: <defaults>
</compile_context>

<pallas_src>
import jax
import jax.numpy as jnp
from jax.experimental import pallas as pl
from jax.experimental.pallas import tpu as pltpu


def _variational_dropout_kernel(x_ref, m_ref, o_ref):
    """Apply the shared (tS, H) scaled dropout mask to an (B, tS, H) tile.

    x_ref : VMEM (B, tS, H)  input tile
    m_ref : VMEM (tS, H)     f32 mask tile, values in {0, 1/keep}, shared over B
    o_ref : VMEM (B, tS, H)  output tile
    """
    x = x_ref[...].astype(jnp.float32)
    o_ref[...] = (x * m_ref[...][None, :, :]).astype(o_ref.dtype)


def _pick_tile_s(B, S, H, itemsize, target_bytes=4 * 1024 * 1024):
    """Pick a sequence-tile size: ~4 MiB x-block, multiple of 8, <= S.

    4 MiB per x block keeps double-buffered (in + out + mask) comfortably under
    the smallest (v7x, 64 MiB physical / 32 MiB scoped) VMEM budget while being
    large enough to amortize per-grid-step overhead on v5e/v6e.
    """
    if S <= 8 or S % 8 != 0:
        # Small or oddly-shaped S: take the whole axis (block == full dim is
        # always legal wrt the (8, 128) tiling constraint).
        return S
    ts = max(8, min(S, target_bytes // max(1, B * H * itemsize)))
    ts -= ts % 8
    return max(8, ts)


def variational_dropout(x, key, droprate=0.5, training=True):
    """JAX wrapper mirroring VariationalDropout.forward for x of shape (B, S, H)."""
    if (not training) or (not droprate):
        return x

    B, S, H = x.shape
    keep = 1.0 - float(droprate)

    # Mask shared over the batch dimension (shape (S, H)), inverted-dropout
    # scaled, kept in f32 for a faithful 1/keep scale.
    bern = jax.random.bernoulli(key, p=keep, shape=(S, H))
    mask = jnp.where(bern, jnp.float32(1.0 / keep), jnp.float32(0.0))

    ts = _pick_tile_s(B, S, H, jnp.dtype(x.dtype).itemsize)
    grid = (pl.cdiv(S, ts),)

    # TODO(synk): H should be a multiple of 128 for fully lane-dense stores; if
    # the real model's hidden size is not, reshape/merge (S, H) in the wrapper.
    return pl.pallas_call(
        _variational_dropout_kernel,
        out_shape=jax.ShapeDtypeStruct(x.shape, x.dtype),
        grid=grid,
        in_specs=[
            pl.BlockSpec((B, ts, H), lambda i: (0, i, 0)),   # x tile
            pl.BlockSpec((ts, H), lambda i: (i, 0)),         # mask tile (shared over B)
        ],
        out_specs=pl.BlockSpec((B, ts, H), lambda i: (0, i, 0)),
        compiler_params=pltpu.CompilerParams(
            dimension_semantics=("parallel",),
        ),
    )(x, mask)


if __name__ == "__main__":
    root = jax.random.PRNGKey(0)
    kx, kmask = jax.random.split(root)

    B, S, H = 2, 8, 128  # small shapes; H multiple of 128 for lane alignment
    x = jax.random.normal(kx, (B, S, H), dtype=jnp.float32)

    p = 0.5
    out = variational_dropout(x, kmask, droprate=p, training=True)
    out = jax.block_until_ready(out)

    # Sanity checks of the PyTorch semantics:
    # 1) each element is either 0 or x / (1 - p)
    keep = 1.0 - p
    ratio = jnp.where(jnp.abs(x) > 1e-6, out / x, 0.0)
    ok_values = jnp.all(
        (jnp.abs(ratio) < 1e-5) | (jnp.abs(ratio - 1.0 / keep) < 1e-4)
    )
    # 2) mask is shared across the batch dimension
    mask0 = jnp.where(jnp.abs(x[0]) > 1e-6, out[0] / x[0], -1.0)
    mask1 = jnp.where(jnp.abs(x[1]) > 1e-6, out[1] / x[1], -1.0)
    shared = jnp.all(
        jnp.where((mask0 >= 0) & (mask1 >= 0), jnp.abs(mask0 - mask1) < 1e-4, True)
    )
    # 3) eval mode / p == 0 is identity
    same_eval = jnp.array_equal(
        variational_dropout(x, kmask, droprate=p, training=False), x
    )
    same_p0 = jnp.array_equal(
        variational_dropout(x, kmask, droprate=0.0, training=True), x
    )

    assert bool(ok_values) and bool(shared) and bool(same_eval) and bool(same_p0)
    print("KERNEL_OK")
</pallas_src>

<mosaic_0001>
module attributes {stable_mosaic.version = 11 : i64} {
  func.func @_variational_dropout_kernel(%arg0: i32, %arg1: memref<2x8x128xf32, #tpu.memory_space<vmem>>, %arg2: memref<8x128xf32, #tpu.memory_space<vmem>>, %arg3: memref<2x8x128xf32, #tpu.memory_space<vmem>>) attributes {dimension_semantics = [#tpu.dimension_semantics<parallel>], iteration_bounds = array<i64: 1>, scalar_prefetch = 0 : i64, scratch_operands = 0 : i64, tpu.core_type = #tpu.core_type<tc>, window_params = [{transform_indices = @transform_0, window_bounds = array<i64: 2, 8, 128>}, {transform_indices = @transform_1, window_bounds = array<i64: 8, 128>}, {transform_indices = @transform_2, window_bounds = array<i64: 2, 8, 128>}]} {
    %c0 = arith.constant 0 : index
    %c0_0 = arith.constant 0 : index
    %c0_1 = arith.constant 0 : index
    %0 = vector.load %arg1[%c0, %c0_0, %c0_1] : memref<2x8x128xf32, #tpu.memory_space<vmem>>, vector<2x8x128xf32>
    %c0_2 = arith.constant 0 : index
    %c0_3 = arith.constant 0 : index
    %1 = vector.load %arg2[%c0_2, %c0_3] : memref<8x128xf32, #tpu.memory_space<vmem>>, vector<8x128xf32>
    %2 = vector.shape_cast %1 : vector<8x128xf32> to vector<1x8x128xf32>
    %3 = vector.broadcast %2 : vector<1x8x128xf32> to vector<2x8x128xf32>
    %4 = arith.mulf %0, %3 : vector<2x8x128xf32>
    %c0_4 = arith.constant 0 : index
    %c0_5 = arith.constant 0 : index
    %c0_6 = arith.constant 0 : index
    %5 = vector.load %arg3[%c0_4, %c0_5, %c0_6] : memref<2x8x128xf32, #tpu.memory_space<vmem>>, vector<2x8x128xf32>
    tpu.vector_store %arg3[%c0_4, %c0_5, %c0_6], %4 {strides = array<i32>} : memref<2x8x128xf32, #tpu.memory_space<vmem>>, vector<2x8x128xf32>,
    return
  }
  func.func @transform_0(%arg0: i32) -> (i32, i32, i32) {
    %c0_i32 = arith.constant 0 : i32
    %c0_i32_0 = arith.constant 0 : i32
    %c0_i32_1 = arith.constant 0 : i32
    return %c0_i32, %arg0, %c0_i32_0 : i32, i32, i32
  }
  func.func @transform_1(%arg0: i32) -> (i32, i32) {
    %c0_i32 = arith.constant 0 : i32
    %c0_i32_0 = arith.constant 0 : i32
    return %arg0, %c0_i32 : i32, i32
  }
  func.func @transform_2(%arg0: i32) -> (i32, i32, i32) {
    %c0_i32 = arith.constant 0 : i32
    %c0_i32_0 = arith.constant 0 : i32
    %c0_i32_1 = arith.constant 0 : i32
    return %c0_i32, %arg0, %c0_i32_0 : i32, i32, i32
  }
}

</mosaic_0001>

<bundles_post_ra>
// kernel: tpu_custom_call.1
= control target key start
LH: loop header
LB: loop body
LE: loop exit
PB: predicated region body
PF: predicated region fallthrough
CT: control target
= control target key end

     0   :  { %7 = vsyncpa [#allocation3], 0  ;;  %s169_s0 = inlined_call_operand.hbm [shape: f32[2,8,128], index: 0, kind: input, shape index: {}]   ;;  %s170_s1 = inlined_call_operand.hbm [shape: f32[8,128], index: 1, kind: input, shape index: {}]   ;;  %s171_s2 = inlined_call_operand.hbm [shape: f32[2,8,128], index: 2, kind: output, shape index: {}]  }
   0x1   :  { %8 = vsyncpa [#allocation6], 0 }
   0x2   :  { %9 = vsyncpa [#allocation4], 0  ;;  %s134_s9 = smov [#allocation2]  }
   0x3   :  { %s15_s10 = sshll.u32 %s134_s9, 4  ;;  %s16_s10 = int_to_ptr.vmem [resolvable:$true] %s15_s10 }
   0x4   :  { %s76_s11 = scalar_lea.vmem %s16_s10, 256  ;;  %p81_p1 = scmp.lt.s32.totalorder %s16_s10, %s16_s10 }
   0x5   :  { %p77_p0 = scmp.ne.s32.totalorder %s16_s10, %s76_s11  ;;  %p82_p2 = scmp.lt.s32.totalorder %s76_s11, %s76_s11 }
   0x7   :  { %p83_p3 = por %p82_p2, %p81_p1 }
   0x9   :  { %p84_p4 = pnand %p83_p3, %p77_p0 }
   0xb   :  { %87 = shalt.err (!%p84_p4)
}
   0xc   :  { %s135_s12 = smov 128   ;;  %s136_s13 = smov 8  }
   0xd   :  { %21 = dma.hbm_to_vmem [thread:$0]  %s169_s0, 256, %s16_s10, [#allocation3], %s135_s12, %s135_s12, %s136_s13  }
   0xe   :  { %s137_s16 = smov [#allocation5]  }
   0xf   :  { %s28_s17 = sshll.u32 %s137_s16, 4  ;;  %s29_s17 = int_to_ptr.vmem [resolvable:$true] %s28_s17 }
  0x10   :  { %s96_s18 = scalar_lea.vmem %s29_s17, 128  ;;  %p101_p6 = scmp.lt.s32.totalorder %s29_s17, %s29_s17 }
  0x11   :  { %p97_p5 = scmp.ne.s32.totalorder %s29_s17, %s96_s18  ;;  %p102_p7 = scmp.lt.s32.totalorder %s96_s18, %s96_s18 }
  0x13   :  { %p103_p8 = por %p102_p7, %p101_p6 }
  0x15   :  { %p104_p9 = pnand %p103_p8, %p97_p5 }
  0x17   :  { %107 = shalt.err (!%p104_p9)
}
  0x18   :  { %31 = dma.hbm_to_vmem [thread:$0]  %s170_s1, 128, %s29_s17, [#allocation6]  }
  0x19   :  { %128 = dma.done.wait [#allocation3], 256  }
  0x1a   :  { %129 = vsyncadd [#allocation3], 4294967040 }
  0x1b   :  { %130 = dma.done.wait [#allocation6], 128  }
  0x1c   :  { %131 = vsyncadd [#allocation6], 4294967168  ;;  %s138_s21 = smov [#allocation7]   ;;  %v38_v0 = vld [vmem:[#allocation2] sm:$0xff]  ;;  %v40_v1 = vld [vmem:[#allocation5] sm:$0xff] }
  0x1d   :  { %s50_s0 = sshll.u32 %s138_s21, 4  ;;  %v39_v2 = vld [vmem:[#allocation2 + $0x8] sm:$0xff]  ;;  %v41_v3 = vmul.f32 %v40_v1, %v38_v0  ;;  %s51_s0 = int_to_ptr.vmem [resolvable:$true] %s50_s0 }
  0x1e   :  { %v42_v4 = vmul.f32 %v40_v1, %v39_v2  ;;  %s108_s22 = scalar_lea.vmem %s51_s0, 256  ;;  %p113_p11 = scmp.lt.s32.totalorder %s51_s0, %s51_s0 }
  0x1f   :  { %43 = vst [vmem:[#allocation7] sm:$0xff] %v41_v3  ;;  %p109_p10 = scmp.ne.s32.totalorder %s51_s0, %s108_s22  ;;  %p114_p12 = scmp.lt.s32.totalorder %s108_s22, %s108_s22 }
  0x20   :  { %44 = vst [vmem:[#allocation7 + $0x8] sm:$0xff] %v42_v4 }
  0x21   :  { %p115_p13 = por %p114_p12, %p113_p11 }
  0x23   :  { %p116_p0 = pnand %p115_p13, %p109_p10 }
  0x25   :  { %119 = shalt.err (!%p116_p0)
}
  0x26   :  { %56 = dma.vmem_to_hbm [thread:$0]  %s51_s0, 256, %s171_s2, [#allocation4], %s135_s12, %s135_s12, %s136_s13  }
  0x27   :  { %132 = dma.done.wait [#allocation4], 256  }
  0x28   :  { %133 = vsyncadd [#allocation4], 4294967040 }
  0x29   :  { %60 = vsyncpa [#allocation3], 1 }
  0x2a   :  { %61 = vsyncpa [#allocation6], 1 }
  0x2b   :  { %62 = vsyncpa [#allocation4], 1 }

</bundles_post_ra>
